<compile_context>
chip_gen: v7x
topology: tpu7x:2x2x1
jax: 0.10.0
libtpu: 0.0.40
codegen_flags: <defaults>
</compile_context>

<pallas_src>
import math
import functools

import jax
import jax.numpy as jnp
from jax.experimental import pallas as pl
from jax.experimental.pallas import tpu as pltpu


def _fused_attention_classifier_kernel(read_ref, kv_tab_ref, qw_ref, qb_ref,
                                       ww_ref, wb_ref,
                                       out_ref, k_look_ref, v_look_ref,
                                       *, scale):
    B, L, E = k_look_ref.shape
    Qs = v_look_ref.shape[-1]
    n_rows = kv_tab_ref.shape[0]
    BL = B * L

    # ---- fused embedding gather: ONE one-hot MXU matmul over [K | V] --------
    idx = read_ref[...]                                               # (BL, 1) i32
    iota = jax.lax.broadcasted_iota(jnp.int32, (BL, n_rows), 1)       # lane iota
    one_hot = jnp.where(idx == iota, 1.0, 0.0).astype(jnp.float32)    # (BL, n_rows)

    gathered = jax.lax.dot_general(one_hot, kv_tab_ref[...],
                                   (((1,), (0,)), ((), ())),
                                   preferred_element_type=jnp.float32)  # (BL, E+Qs)
    k_flat = gathered[:, :E]          # lane slice [0, 128)  -> tile-aligned
    v_flat = gathered[:, E:]          # lane slice [128, ..) -> starts on tile

    # Store lookups EARLY: ends k_flat's live range before the softmax phase
    # (k_flat is not needed again because the Q linear is folded below).
    k_look_ref[...] = k_flat.reshape(B, L, E)
    v_look_ref[...] = v_flat.reshape(B, L, Qs)

    # ---- Q linear folded into the gather via associativity ------------------
    # one_hot @ (K_table @ Qw^T) == K_lookup @ Qw^T  (one-hot row selection is
    # exact).  Scale is applied AFTER the bias add, exactly like PyTorch.
    kq = jax.lax.dot_general(kv_tab_ref[:, :E], qw_ref[...],
                             (((1,), (1,)), ((), ())),
                             preferred_element_type=jnp.float32)        # (n_rows, Qs)
    logits_flat = (jax.lax.dot_general(one_hot, kq,
                                       (((1,), (0,)), ((), ())),
                                       preferred_element_type=jnp.float32)
                   + qb_ref[...]) * scale                               # (BL, Qs)

    logits = logits_flat.reshape(B, L, Qs)
    v_look = v_flat.reshape(B, L, Qs)

    # ---- softmax over the BATCH axis (dim=0), as in the PyTorch module ------
    m = jnp.max(logits, axis=0, keepdims=True)                          # (1, L, Qs)
    e = jnp.exp(logits - m)
    denom = jnp.sum(e, axis=0, keepdims=True)                           # (1, L, Qs)
    probs = e * pl.reciprocal(denom, approx=False)   # one recip + cheap VPU muls

    # ---- X = (probs * V_lookup).sum(dim=1)  -> (B, Qs) ----------------------
    x = jnp.sum(probs * v_look, axis=1)

    # ---- W linear: contract Ww's last dim (== X @ Ww.T) + bias --------------
    out_ref[...] = (jax.lax.dot_general(x, ww_ref[...],
                                        (((1,), (1,)), ((), ())),
                                        preferred_element_type=jnp.float32)
                    + wb_ref[...])


@functools.partial(jax.jit, static_argnums=2)
def sequence_attention_classifier(read, params, embedding_size):
    """Single fused Pallas call: gather + Q linear + softmax(dim=0) + W linear."""
    k_table, v_table = params["K"], params["V"]
    q_w, q_b = params["Qw"], params["Qb"]
    w_w, w_b = params["Ww"], params["Wb"]

    B, L = read.shape
    n_rows, E = k_table.shape
    Qs = q_w.shape[0]
    C = w_w.shape[0]

    # Tiny (n_rows, E+Qs) concat so the kernel does a single gather matmul.
    kv_table = jnp.concatenate([k_table, v_table], axis=1)
    read_flat = read.reshape(B * L, 1).astype(jnp.int32)
    qb2 = q_b.reshape(1, Qs)
    wb2 = w_b.reshape(1, C)

    kernel = functools.partial(_fused_attention_classifier_kernel,
                               scale=1.0 / math.sqrt(embedding_size))

    vmem = pl.BlockSpec(memory_space=pltpu.MemorySpace.VMEM)
    out, k_lookup, v_lookup = pl.pallas_call(
        kernel,
        out_shape=(jax.ShapeDtypeStruct((B, C), jnp.float32),
                   jax.ShapeDtypeStruct((B, L, E), jnp.float32),
                   jax.ShapeDtypeStruct((B, L, Qs), jnp.float32)),
        in_specs=[vmem] * 6,
        out_specs=(vmem, vmem, vmem),
    )(read_flat, kv_table, q_w, qb2, w_w, wb2)

    return out, k_lookup, v_lookup


def _reference(read, params, embedding_size):
    """Pure-JAX reference of the PyTorch forward, for a correctness check."""
    k_lookup = jnp.take(params["K"], read, axis=0)
    v_lookup = jnp.take(params["V"], read, axis=0)
    logits = (k_lookup @ params["Qw"].T + params["Qb"]) / math.sqrt(embedding_size)
    probs = jax.nn.softmax(logits, axis=0)
    X = (probs * v_lookup).sum(axis=1)
    out = X @ params["Ww"].T + params["Wb"]
    return out, k_lookup, v_lookup


if __name__ == "__main__":
    # Module hyperparameters (defaults from __init__, small genome_length/batch)
    genome_length = 16
    vocab_size = 5
    query_size = 10
    embedding_size = 128
    num_classes = 2
    batch = 8

    key = jax.random.PRNGKey(0)
    kK, kV, kQw, kQb, kWw, kWb, kread = jax.random.split(key, 7)

    n_rows = vocab_size * genome_length   # nn.Embedding(vocab_size * genome_length, ...)
    params = {
        "K": jax.random.normal(kK, (n_rows, embedding_size), jnp.float32),
        "V": jax.random.normal(kV, (n_rows, query_size), jnp.float32),
        "Qw": jax.random.normal(kQw, (query_size, embedding_size), jnp.float32)
              * (1.0 / math.sqrt(embedding_size)),
        "Qb": jax.random.normal(kQb, (query_size,), jnp.float32) * 0.1,
        "Ww": jax.random.normal(kWw, (num_classes, query_size), jnp.float32)
              * (1.0 / math.sqrt(query_size)),
        "Wb": jax.random.normal(kWb, (num_classes,), jnp.float32) * 0.1,
    }

    read = jax.random.randint(kread, (batch, genome_length), 0, n_rows, jnp.int32)

    out, k_lookup, v_lookup = sequence_attention_classifier(read, params, embedding_size)
    out = jax.block_until_ready(out)
    k_lookup = jax.block_until_ready(k_lookup)
    v_lookup = jax.block_until_ready(v_lookup)

    ref_out, ref_k, ref_v = _reference(read, params, embedding_size)
    assert jnp.allclose(out, ref_out, atol=1e-5, rtol=1e-5), "classifier output mismatch"
    assert jnp.allclose(k_lookup, ref_k, atol=1e-5, rtol=1e-5), "K_lookup mismatch"
    assert jnp.allclose(v_lookup, ref_v, atol=1e-5, rtol=1e-5), "V_lookup mismatch"

    print("KERNEL_OK")
</pallas_src>

<mosaic_0001>
module attributes {stable_mosaic.version = 11 : i64} {
  func.func @_fused_attention_classifier_kernel(%arg0: memref<128x1xi32, #tpu.memory_space<vmem>>, %arg1: memref<80x138xf32, #tpu.memory_space<vmem>>, %arg2: memref<10x128xf32, #tpu.memory_space<vmem>>, %arg3: memref<1x10xf32, #tpu.memory_space<vmem>>, %arg4: memref<2x10xf32, #tpu.memory_space<vmem>>, %arg5: memref<1x2xf32, #tpu.memory_space<vmem>>, %arg6: memref<8x2xf32, #tpu.memory_space<vmem>>, %arg7: memref<8x16x128xf32, #tpu.memory_space<vmem>>, %arg8: memref<8x16x10xf32, #tpu.memory_space<vmem>>) attributes {dimension_semantics = [], scalar_prefetch = 0 : i64, scratch_operands = 0 : i64, tpu.core_type = #tpu.core_type<tc>} {
    %c0 = arith.constant 0 : index
    %c0_0 = arith.constant 0 : index
    %0 = vector.load %arg0[%c0, %c0_0] : memref<128x1xi32, #tpu.memory_space<vmem>>, vector<128x1xi32>
    %1 = tpu.iota {dimensions = array<i32: 1>} : vector<128x80xi32>
    %2 = vector.broadcast %0 : vector<128x1xi32> to vector<128x80xi32>
    %3 = arith.cmpi eq, %2, %1 : vector<128x80xi32>
    %cst = arith.constant 1.000000e+00 : f32
    %cst_1 = arith.constant 0.000000e+00 : f32
    %4 = vector.broadcast %cst : f32 to vector<128x80xf32>
    %5 = vector.broadcast %cst_1 : f32 to vector<128x80xf32>
    %6 = arith.select %3, %4, %5 : vector<128x80xi1>, vector<128x80xf32>
    %c0_2 = arith.constant 0 : index
    %c0_3 = arith.constant 0 : index
    %7 = vector.load %arg1[%c0_2, %c0_3] : memref<80x138xf32, #tpu.memory_space<vmem>>, vector<80x138xf32>
    %cst_4 = arith.constant dense<0.000000e+00> : vector<128x138xf32>
    %8 = tpu.matmul %6, %7, %cst_4 {dimension_numbers = #tpu.dot_dimension_numbers<[1], [0], [0], [1], [0, 0, 1, 1], [], []>} : vector<128x80xf32>, vector<80x138xf32>, vector<128x138xf32> -> vector<128x138xf32>
    %9 = vector.extract_strided_slice %8 {offsets = [0, 0], sizes = [128, 128], strides = [1, 1]} : vector<128x138xf32> to vector<128x128xf32>
    %10 = vector.extract_strided_slice %8 {offsets = [0, 128], sizes = [128, 10], strides = [1, 1]} : vector<128x138xf32> to vector<128x10xf32>
    %11 = vector.shape_cast %9 : vector<128x128xf32> to vector<8x16x128xf32>
    %c0_5 = arith.constant 0 : index
    %c0_6 = arith.constant 0 : index
    %c0_7 = arith.constant 0 : index
    %12 = vector.load %arg7[%c0_5, %c0_6, %c0_7] : memref<8x16x128xf32, #tpu.memory_space<vmem>>, vector<8x16x128xf32>
    tpu.vector_store %arg7[%c0_5, %c0_6, %c0_7], %11 {strides = array<i32>} : memref<8x16x128xf32, #tpu.memory_space<vmem>>, vector<8x16x128xf32>,
    %13 = vector.shape_cast %10 : vector<128x10xf32> to vector<8x16x10xf32>
    %c0_8 = arith.constant 0 : index
    %c0_9 = arith.constant 0 : index
    %c0_10 = arith.constant 0 : index
    %14 = vector.load %arg8[%c0_8, %c0_9, %c0_10] : memref<8x16x10xf32, #tpu.memory_space<vmem>>, vector<8x16x10xf32>
    tpu.vector_store %arg8[%c0_8, %c0_9, %c0_10], %13 {strides = array<i32>} : memref<8x16x10xf32, #tpu.memory_space<vmem>>, vector<8x16x10xf32>,
    %c0_11 = arith.constant 0 : index
    %c0_12 = arith.constant 0 : index
    %15 = vector.load %arg1[%c0_11, %c0_12] : memref<80x138xf32, #tpu.memory_space<vmem>>, vector<80x128xf32>
    %c0_13 = arith.constant 0 : index
    %c0_14 = arith.constant 0 : index
    %16 = vector.load %arg2[%c0_13, %c0_14] : memref<10x128xf32, #tpu.memory_space<vmem>>, vector<10x128xf32>
    %cst_15 = arith.constant dense<0.000000e+00> : vector<80x10xf32>
    %17 = tpu.matmul %15, %16, %cst_15 {dimension_numbers = #tpu.dot_dimension_numbers<[1], [1], [0], [0], [0, 0, 1, 0], [], []>} : vector<80x128xf32>, vector<10x128xf32>, vector<80x10xf32> -> vector<80x10xf32>
    %cst_16 = arith.constant dense<0.000000e+00> : vector<128x10xf32>
    %18 = tpu.matmul %6, %17, %cst_16 {dimension_numbers = #tpu.dot_dimension_numbers<[1], [0], [0], [1], [0, 0, 1, 1], [], []>} : vector<128x80xf32>, vector<80x10xf32>, vector<128x10xf32> -> vector<128x10xf32>
    %c0_17 = arith.constant 0 : index
    %c0_18 = arith.constant 0 : index
    %19 = vector.load %arg3[%c0_17, %c0_18] : memref<1x10xf32, #tpu.memory_space<vmem>>, vector<1x10xf32>
    %20 = vector.broadcast %19 : vector<1x10xf32> to vector<128x10xf32>
    %21 = arith.addf %18, %20 : vector<128x10xf32>
    %cst_19 = arith.constant 0.0883883461 : f32
    %22 = vector.broadcast %cst_19 : f32 to vector<128x10xf32>
    %23 = arith.mulf %21, %22 : vector<128x10xf32>
    %24 = vector.shape_cast %23 : vector<128x10xf32> to vector<8x16x10xf32>
    %25 = vector.shape_cast %10 : vector<128x10xf32> to vector<8x16x10xf32>
    %cst_20 = arith.constant dense<0xFF800000> : vector<16x10xf32>
    %26 = vector.multi_reduction <maximumf>, %24, %cst_20 [0] : vector<8x16x10xf32> to vector<16x10xf32>
    %27 = vector.shape_cast %26 : vector<16x10xf32> to vector<1x16x10xf32>
    %28 = vector.broadcast %27 : vector<1x16x10xf32> to vector<8x16x10xf32>
    %29 = arith.subf %24, %28 : vector<8x16x10xf32>
    %30 = math.exp %29 : vector<8x16x10xf32>
    %cst_21 = arith.constant dense<0.000000e+00> : vector<16x10xf32>
    %31 = vector.multi_reduction <add>, %30, %cst_21 [0] : vector<8x16x10xf32> to vector<16x10xf32>
    %32 = vector.shape_cast %31 : vector<16x10xf32> to vector<1x16x10xf32>
    %33 = tpu.reciprocal %32 : vector<1x16x10xf32> -> vector<1x16x10xf32>
    %34 = vector.broadcast %33 : vector<1x16x10xf32> to vector<8x16x10xf32>
    %35 = arith.mulf %30, %34 : vector<8x16x10xf32>
    %36 = arith.mulf %35, %25 : vector<8x16x10xf32>
    %cst_22 = arith.constant dense<0.000000e+00> : vector<8x10xf32>
    %37 = vector.multi_reduction <add>, %36, %cst_22 [1] : vector<8x16x10xf32> to vector<8x10xf32>
    %c0_23 = arith.constant 0 : index
    %c0_24 = arith.constant 0 : index
    %38 = vector.load %arg4[%c0_23, %c0_24] : memref<2x10xf32, #tpu.memory_space<vmem>>, vector<2x10xf32>
    %cst_25 = arith.constant dense<0.000000e+00> : vector<8x2xf32>
    %39 = tpu.matmul %37, %38, %cst_25 {dimension_numbers = #tpu.dot_dimension_numbers<[1], [1], [0], [0], [0, 0, 1, 0], [], []>} : vector<8x10xf32>, vector<2x10xf32>, vector<8x2xf32> -> vector<8x2xf32>
    %c0_26 = arith.constant 0 : index
    %c0_27 = arith.constant 0 : index
    %40 = vector.load %arg5[%c0_26, %c0_27] : memref<1x2xf32, #tpu.memory_space<vmem>>, vector<1x2xf32>
    %41 = vector.broadcast %40 : vector<1x2xf32> to vector<8x2xf32>
    %42 = arith.addf %39, %41 : vector<8x2xf32>
    %c0_28 = arith.constant 0 : index
    %c0_29 = arith.constant 0 : index
    %43 = vector.load %arg6[%c0_28, %c0_29] : memref<8x2xf32, #tpu.memory_space<vmem>>, vector<8x2xf32>
    tpu.vector_store %arg6[%c0_28, %c0_29], %42 {strides = array<i32>} : memref<8x2xf32, #tpu.memory_space<vmem>>, vector<8x2xf32>,
    return
  }
}

</mosaic_0001>

<bundles_post_ra>
// kernel: sequence_attention_classifier.1
= control target key start
LH: loop header
LB: loop body
LE: loop exit
PB: predicated region body
PF: predicated region fallthrough
CT: control target
= control target key end

     0   :  { %v1284_v4 = vmov 0   ;;  %v1285_v5 = vmov 0.0   ;;  %s1835_s0 = inlined_call_operand.vmem [shape: s32[128,1], index: 0, kind: input, shape index: {}]   ;;  %s1836_s1 = inlined_call_operand.vmem [shape: f32[80,138], index: 1, kind: input, shape index: {}]   ;;  %s1837_s2 = inlined_call_operand.vmem [shape: f32[10,128], index: 2, kind: input, shape index: {}]   ;;  %s1838_s3 = inlined_call_operand.vmem [shape: f32[1,10], index: 3, kind: input, shape index: {}]   ;;  %s1839_s4 = inlined_call_operand.vmem [shape: f32[2,10], index: 4, kind: input, shape index: {}]   ;;  %s1840_s5 = inlined_call_operand.vmem [shape: f32[1,2], index: 5, kind: input, shape index: {}]   ;;  %s1841_s6 = inlined_call_operand.vmem [shape: f32[8,2], index: 6, kind: output, shape index: {0}]   ;;  %s1842_s7 = inlined_call_operand.hbm [shape: f32[8,16,128], index: 7, kind: output, shape index: {1}]   ;;  %s1843_s8 = inlined_call_operand.vmem [shape: f32[8,16,10], index: 8, kind: output, shape index: {2}]  }
   0x1   :  { %v398_v0 = vld [vmem:[%s1837_s2] sm:$0xff]  ;;  %v399_v1 = vld [vmem:[%s1837_s2 + $0x8] sm:$0x3]  ;;  %1222 = vset.pattern.permute.xlu0 %v1284_v4  ;;  %1223 = vset.pattern.permute.xlu1 %v1284_v4  ;;  %v29_v7 = vld [vmem:[%s1835_s0 + $0x10] sm:$0xff] }
   0x2   :  { %v388_v2 = vld [vmem:[%s1836_s1] sm:$0xff]  ;;  %v1192_v3 = vpack.c.bf16 %v399_v1, %v398_v0  ;;  %258 = vmatprep.mubr.f32.mxu0 %v1285_v5  ;;  %52 = vperm.xlu1 %1223, %v29_v7   ;;  %v28_v8 = vld [vmem:[%s1835_s0 + $0x8] sm:$0xff]  ;;  %v30_v9 = vld [vmem:[%s1835_s0 + $0x18] sm:$0xff] }
   0x3   :  { %1108 = vmatprep.mubr.f32.mxu1 %v388_v2  ;;  %v27_v6 = vld [vmem:[%s1835_s0] sm:$0xff]  ;;  %v389_v10 = vld [vmem:[%s1836_s1 + $0x10] sm:$0xff]  ;;  %v126_v13 = vld [vmem:[%s1836_s1 + $0x8] sm:$0xff] }
   0x4   :  { %1193 = vmatprep.subr.bf16.mxu1 %v1192_v3  ;;  %46 = vperm.xlu0 %1222, %v27_v6   ;;  %v390_v11 = vld [vmem:[%s1836_s1 + $0x20] sm:$0xff]  ;;  %v128_v14 = vld [vmem:[%s1836_s1 + $0x18] sm:$0xff]  ;;  %v32_v15 = vld [vmem:[%s1835_s0 + $0x28] sm:$0xff]  ;;  %v1174_v17 = vpack.c.bf16 %v389_v10, %v388_v2 }
   0x5   :  { %1195 = vmatpush3.bf16.xpose.msra.mxu1 %v1192_v3  ;;  %v31_v12 = vld [vmem:[%s1835_s0 + $0x20] sm:$0xff]  ;;  %v1172_v16 = vpack.c.bf16 %v128_v14, %v126_v13  ;;  %v130_v18 = vld [vmem:[%s1836_s1 + $0x28] sm:$0xff]  ;;  %v132_v19 = vld [vmem:[%s1836_s1 + $0x38] sm:$0xff] }
   0x6   :  { %55 = vperm.xlu1 %1223, %v30_v9   ;;  %v391_v20 = vld [vmem:[%s1836_s1 + $0x30] sm:$0xff]  ;;  %v1176_v21 = vpack.c.bf16 %v132_v19, %v130_v18  ;;  %v134_v22 = vld [vmem:[%s1836_s1 + $0x48] sm:$0xff]  ;;  %v136_v23 = vld [vmem:[%s1836_s1 + $0x58] sm:$0xff] }
   0x7   :  { %1173 = vmatprep.subr.bf16.mxu0 %v1172_v16 }
   0x8   :  { %49 = vperm.xlu0 %1222, %v28_v8  }
   0xc   :  { %1109 = vmatmul.mubr.f32.vlgmr.msra.gmra.mrb[0].mxu1 %v389_v10 }
   0xd   :  { %1111 = vmatprep.mubr.f32.mxu1 %v390_v11 }
   0xe   :  { %14 = vsyncpa [#allocation3], 0  ;;  %v392_v24 = vld [vmem:[%s1836_s1 + $0x40] sm:$0xff]  ;;  %58 = vperm.xlu0 %1222, %v31_v12   ;;  %61 = vperm.xlu1 %1223, %v32_v15   ;;  %v33_v25 = vld [vmem:[%s1835_s0 + $0x30] sm:$0xff]  ;;  %v1178_v27 = vpack.c.bf16 %v391_v20, %v390_v11  ;;  %v1180_v28 = vpack.c.bf16 %v136_v23, %v134_v22  ;;  %v43_v51 = vlaneseq  ;;  %vm145_vm0 = vcmask 654336  }
   0xf   :  { %v34_v26 = vld [vmem:[%s1835_s0 + $0x38] sm:$0xff]  ;;  %1175 = vmatpush1.bf16.msra.mxu0 %v1174_v17  ;;  %v393_v29 = vld [vmem:[%s1836_s1 + $0x50] sm:$0xff]  ;;  %v138_v30 = vld [vmem:[%s1836_s1 + $0x68] sm:$0xff] }
  0x10   :  { %1112 = vmatmul.mubr.f32.gmra.mrb[2].mxu1 %v391_v20  ;;  %1177 = vmatprep.subr.bf16.mxu0 %v1176_v21  ;;  %v140_v31 = vld [vmem:[%s1836_s1 + $0x78] sm:$0xff]  ;;  %v394_v32 = vld [vmem:[%s1836_s1 + $0x60] sm:$0xff]  ;;  %v36_v34 = vld [vmem:[%s1835_s0 + $0x48] sm:$0xff]  ;;  %v1182_v35 = vpack.c.bf16 %v393_v29, %v392_v24  ;;  %v1450_v52 = vand.u32 127, %v43_v51 }
  0x11   :  { %1114 = vmatprep.mubr.f32.mxu1 %v392_v24  ;;  %v35_v33 = vld [vmem:[%s1835_s0 + $0x40] sm:$0xff]  ;;  %v1184_v36 = vpack.c.bf16 %v140_v31, %v138_v30  ;;  %v395_v37 = vld [vmem:[%s1836_s1 + $0x70] sm:$0xff]  ;;  %v142_v38 = vld [vmem:[%s1836_s1 + $0x88] sm:$0xff] }
  0x12   :  { %64 = vperm.xlu0 %1222, %v33_v25   ;;  %67 = vperm.xlu1 %1223, %v34_v26   ;;  %v144_v39 = vld [vmem:[%s1836_s1 + $0x98] sm:$0xff]  ;;  %v396_v40 = vld [vmem:[%s1836_s1 + $0x80] sm:$0xff]  ;;  %v37_v41 = vld [vmem:[%s1835_s0 + $0x50] sm:$0xff]  ;;  %v1186_v43 = vpack.c.bf16 %v395_v37, %v394_v32 }
  0x13   :  { %1179 = vmatpush1.bf16.msra.mxu0 %v1178_v27  ;;  %v38_v42 = vld [vmem:[%s1835_s0 + $0x58] sm:$0xff]  ;;  %v1188_v44 = vpack.c.bf16 %v144_v39, %v142_v38  ;;  %v397_v45 = vld [vmem:[%s1836_s1 + $0x90] sm:$0xff]  ;;  %v39_v46 = vld [vmem:[%s1835_s0 + $0x60] sm:$0xff] }
  0x14   :  { %1115 = vmatmul.mubr.f32.gmra.mrb[4].mxu1 %v393_v29  ;;  %1181 = vmatprep.subr.bf16.mxu0 %v1180_v28  ;;  %v40_v47 = vld [vmem:[%s1835_s0 + $0x68] sm:$0xff]  ;;  %v1190_v48 = vpack.c.bf16 %v397_v45, %v396_v40  ;;  %v41_v49 = vld [vmem:[%s1835_s0 + $0x70] sm:$0xff]  ;;  %v42_v50 = vld [vmem:[%s1835_s0 + $0x78] sm:$0xff] }
  0x15   :  { %1117 = vmatprep.mubr.f32.mxu1 %v394_v32 }
  0x16   :  { %70 = vperm.xlu0 %1222, %v35_v33   ;;  %73 = vperm.xlu1 %1223, %v36_v34  }
  0x17   :  { %1183 = vmatpush1.bf16.msra.mxu0 %v1182_v35 }
  0x18   :  { %1118 = vmatmul.mubr.f32.gmra.mrb[6].mxu1 %v395_v37  ;;  %1185 = vmatprep.subr.bf16.mxu0 %v1184_v36 }
  0x19   :  { %1120 = vmatprep.mubr.f32.mxu1 %v396_v40 }
  0x1a   :  { %76 = vperm.xlu0 %1222, %v37_v41   ;;  %79 = vperm.xlu1 %1223, %v38_v42  }
  0x1b   :  { %1187 = vmatpush1.bf16.msra.mxu0 %v1186_v43 }
  0x1c   :  { %1121 = vmatmul.mubr.f32.gmra.mrb[8].mxu1 %v397_v45  ;;  %1189 = vmatprep.subr.bf16.mxu0 %v1188_v44 }
  0x1e   :  { %82 = vperm.xlu0 %1222, %v39_v46   ;;  %85 = vperm.xlu1 %1223, %v40_v47  }
  0x1f   :  { %1191 = vmatpush1.bf16.msra.mxu0 %v1190_v48 }
  0x22   :  { %88 = vperm.xlu0 %1222, %v41_v49   ;;  %91 = vperm.xlu1 %1223, %v42_v50  }
  0x81   :  { %v53_v54 = vpop.permute.xlu1 %52 }
  0x82   :  { %vm95_vm3 = vcmp.eq.s32.totalorder %v53_v54, %v1450_v52 }
  0x83   :  { %v47_v53 = vpop.permute.xlu0 %46  ;;  %v1465_v59 = vsel %vm95_vm3, 1.0, %v1285_v5  ;;  %vm913_vm3 = vcmask 1041409  }
  0x84   :  { %vm93_vm1 = vcmp.eq.s32.totalorder %v47_v53, %v1450_v52 }
  0x85   :  { %v109_v55 = vsel %vm93_vm1, 1.0, %v1285_v5  ;;  %v56_v58 = vpop.permute.xlu1 %55 }
  0x86   :  { %1028 = vmatmul.mubr.msk.f32.vlgmr.msra.gmra.mrb[0].mxu0 %vm145_vm0, %v109_v55  ;;  %1143 = vmatprep.mubr.msk.f32.mxu1 %vm145_vm0, %v109_v55  ;;  %vm96_vm4 = vcmp.eq.s32.totalorder %v56_v58, %v1450_v52 }
  0x87   :  { %v50_v56 = vpop.permute.xlu0 %49  ;;  %264 = vmatprep.mubr.f32.mxu0 %v1285_v5  ;;  %v1472_v61 = vsel %vm96_vm4, 1.0, %v1285_v5  ;;  %vm915_vm4 = vcmask 1042434  }
  0x88   :  { %vm94_vm2 = vcmp.eq.s32.totalorder %v50_v56, %v1450_v52 }
  0x89   :  { %v1460_v57 = vsel %vm94_vm2, 1.0, %v1285_v5  ;;  %vm371_vm2 = vcmask 80896  }
  0x8a   :  { %1029 = vmatmul.mubr.msk.f32.gmra.mrb[2].mxu0 %vm145_vm0, %v1460_v57 }
  0x8b   :  { %270 = vmatprep.mubr.f32.mxu0 %v1285_v5 }
  0x8d   :  { %v59_v60 = vpop.permute.xlu0 %58  ;;  %v62_v62 = vpop.permute.xlu1 %61 }
  0x8e   :  { %1030 = vmatmul.mubr.msk.f32.gmra.mrb[4].mxu0 %vm145_vm0, %v1465_v59  ;;  %vm97_vm5 = vcmp.eq.s32.totalorder %v59_v60, %v1450_v52  ;;  %vm98_vm6 = vcmp.eq.s32.totalorder %v62_v62, %v1450_v52 }
  0x8f   :  { %276 = vmatprep.mubr.f32.mxu0 %v1285_v5  ;;  %v1479_v63 = vsel %vm97_vm5, 1.0, %v1285_v5  ;;  %v1486_v1 = vsel %vm98_vm6, 1.0, %v1285_v5  ;;  %vm917_vm5 = vcmask 1043459   ;;  %vm919_vm6 = vcmask 1044484  }
  0x91   :  { %v65_v0 = vpop.permute.xlu0 %64  ;;  %v68_v2 = vpop.permute.xlu1 %67 }
  0x92   :  { %1031 = vmatmul.mubr.msk.f32.gmra.mrb[6].mxu0 %vm145_vm0, %v1472_v61  ;;  %vm99_vm7 = vcmp.eq.s32.totalorder %v65_v0, %v1450_v52  ;;  %vm100_vm8 = vcmp.eq.s32.totalorder %v68_v2, %v1450_v52 }
  0x93   :  { %282 = vmatprep.mubr.f32.mxu0 %v1285_v5  ;;  %v1493_v3 = vsel %vm99_vm7, 1.0, %v1285_v5  ;;  %v1500_v6 = vsel %vm100_vm8, 1.0, %v1285_v5  ;;  %vm921_vm7 = vcmask 1045509   ;;  %vm923_vm8 = vcmask 1046534  }
  0x95   :  { %v71_v4 = vpop.permute.xlu0 %70  ;;  %v74_v7 = vpop.permute.xlu1 %73 }
  0x96   :  { %1032 = vmatmul.mubr.msk.f32.gmra.mrb[8].mxu0 %vm145_vm0, %v1479_v63  ;;  %vm101_vm9 = vcmp.eq.s32.totalorder %v71_v4, %v1450_v52  ;;  %vm102_vm10 = vcmp.eq.s32.totalorder %v74_v7, %v1450_v52 }
  0x97   :  { %288 = vmatprep.mubr.f32.mxu0 %v1285_v5  ;;  %v1507_v8 = vsel %vm101_vm9, 1.0, %v1285_v5  ;;  %v1514_v10 = vsel %vm102_vm10, 1.0, %v1285_v5  ;;  %vm925_vm9 = vcmask 1047559  }
  0x99   :  { %v77_v9 = vpop.permute.xlu0 %76  ;;  %v80_v11 = vpop.permute.xlu1 %79 }
  0x9a   :  { %1033 = vmatmul.mubr.msk.f32.gmra.mrb[10].mxu0 %vm145_vm0, %v1486_v1  ;;  %vm103_vm11 = vcmp.eq.s32.totalorder %v77_v9, %v1450_v52  ;;  %vm104_vm12 = vcmp.eq.s32.totalorder %v80_v11, %v1450_v52 }
  0x9b   :  { %294 = vmatprep.mubr.f32.mxu0 %v1285_v5  ;;  %v119_v12 = vsel %vm103_vm11, 1.0, %v1285_v5  ;;  %v120_v14 = vsel %vm104_vm12, 1.0, %v1285_v5 }
  0x9d   :  { %v83_v13 = vpop.permute.xlu0 %82  ;;  %v86_v15 = vpop.permute.xlu1 %85 }
  0x9e   :  { %1034 = vmatmul.mubr.msk.f32.gmra.mrb[12].mxu0 %vm145_vm0, %v1493_v3  ;;  %vm105_vm13 = vcmp.eq.s32.totalorder %v83_v13, %v1450_v52  ;;  %vm106_vm14 = vcmp.eq.s32.totalorder %v86_v15, %v1450_v52 }
  0x9f   :  { %300 = vmatprep.mubr.f32.mxu0 %v1285_v5  ;;  %v121_v16 = vsel %vm105_vm13, 1.0, %v1285_v5  ;;  %v122_v18 = vsel %vm106_vm14, 1.0, %v1285_v5 }
  0xa1   :  { %v89_v17 = vpop.permute.xlu0 %88  ;;  %v92_v19 = vpop.permute.xlu1 %91 }
  0xa2   :  { %1035 = vmatmul.mubr.msk.f32.gmra.mrb[14].mxu0 %vm145_vm0, %v1500_v6  ;;  %vm107_vm15 = vcmp.eq.s32.totalorder %v89_v17, %v1450_v52  ;;  %vm108_vm1 = vcmp.eq.s32.totalorder %v92_v19, %v1450_v52 }
  0xa3   :  { %306 = vmatprep.mubr.f32.mxu0 %v1285_v5  ;;  %v123_v20 = vsel %vm107_vm15, 1.0, %v1285_v5  ;;  %v124_v21 = vsel %vm108_vm1, 1.0, %v1285_v5 }
  0xa6   :  { %1036 = vmatmul.mubr.msk.f32.gmra.mrb[16].mxu0 %vm145_vm0, %v1507_v8 }
  0xa7   :  { %312 = vmatprep.mubr.f32.mxu0 %v1285_v5 }
  0xaa   :  { %1037 = vmatmul.mubr.msk.f32.gmra.mrb[18].mxu0 %vm145_vm0, %v1514_v10 }
  0xab   :  { %318 = vmatprep.mubr.f32.mxu0 %v1285_v5 }
  0xae   :  { %1038 = vmatmul.mubr.msk.f32.gmra.mrb[20].mxu0 %vm145_vm0, %v119_v12 }
  0xaf   :  { %324 = vmatprep.mubr.f32.mxu0 %v1285_v5 }
  0xb2   :  { %1039 = vmatmul.mubr.msk.f32.gmra.mrb[22].mxu0 %vm145_vm0, %v120_v14 }
  0xb3   :  { %330 = vmatprep.mubr.f32.mxu0 %v1285_v5 }
  0xb6   :  { %1040 = vmatmul.mubr.msk.f32.gmra.mrb[24].mxu0 %vm145_vm0, %v121_v16 }
  0xb7   :  { %336 = vmatprep.mubr.f32.mxu0 %v1285_v5 }
  0xba   :  { %1041 = vmatmul.mubr.msk.f32.gmra.mrb[26].mxu0 %vm145_vm0, %v122_v18 }
  0xbb   :  { %342 = vmatprep.mubr.f32.mxu0 %v1285_v5 }
  0xbe   :  { %1042 = vmatmul.mubr.msk.f32.gmra.mrb[28].mxu0 %vm145_vm0, %v123_v20 }
  0xbf   :  { %348 = vmatprep.mubr.f32.mxu0 %v1285_v5 }
  0xc2   :  { %1043 = vmatmul.mubr.msk.f32.gmra.mrb[30].mxu0 %vm145_vm0, %v124_v21 }
  0xdf   :  { %v1110_v22 = vpop.f32.mrb[0].mxu1 }
  0xe0   :  { %v466_v23 = vpop.f32.mrb[1].mxu1 }
  0xe1   :  { %v1196_v24 = vpack.c.bf16 %v1110_v22, %v466_v23 }
  0xe3   :  { %v1113_v25 = vpop.f32.mrb[2].mxu1  ;;  %1197 = vmatprep.subr.bf16.mxu1 %v1196_v24 }
  0xe4   :  { %v476_v26 = vpop.f32.mrb[3].mxu1  ;;  %1199 = vmatpush3.bf16.msra.mxu1 %v1196_v24 }
  0xe5   :  { %v1200_v27 = vpack.c.bf16 %v1113_v25, %v476_v26 }
  0xe7   :  { %v1116_v28 = vpop.f32.mrb[4].mxu1  ;;  %1201 = vmatprep.subr.bf16.mxu1 %v1200_v27 }
  0xe8   :  { %v486_v29 = vpop.f32.mrb[5].mxu1  ;;  %1203 = vmatpush3.bf16.msra.mxu1 %v1200_v27 }
  0xe9   :  { %v1204_v30 = vpack.c.bf16 %v1116_v28, %v486_v29 }
  0xeb   :  { %v1119_v31 = vpop.f32.mrb[6].mxu1  ;;  %1205 = vmatprep.subr.bf16.mxu1 %v1204_v30 }
  0xec   :  { %v496_v32 = vpop.f32.mrb[7].mxu1  ;;  %1207 = vmatpush3.bf16.msra.mxu1 %v1204_v30 }
  0xed   :  { %v1208_v33 = vpack.c.bf16 %v1119_v31, %v496_v32 }
  0xef   :  { %v1122_v34 = vpop.f32.mrb[8].mxu1  ;;  %1209 = vmatprep.subr.bf16.mxu1 %v1208_v33 }
  0xf0   :  { %v506_v35 = vpop.f32.mrb[9].mxu1  ;;  %1211 = vmatpush3.bf16.msra.mxu1 %v1208_v33 }
  0xf1   :  { %v1212_v36 = vpack.c.bf16 %v1122_v34, %v506_v35 }
  0xf3   :  { %1213 = vmatprep.subr.bf16.mxu1 %v1212_v36 }
  0xf4   :  { %1215 = vmatpush3.bf16.msra.mxu1 %v1212_v36 }
  0xf5   :  { %1167 = vmatprep.subr.mxu1 %v1285_v5 }
  0xf7   :  { %1144 = vmatmul.mubr.msk.f32.vlgmr.msra.gmra.mrb[10].mxu1 %vm145_vm0, %v1460_v57 }
  0xf8   :  { %1146 = vmatprep.mubr.msk.f32.mxu1 %vm145_vm0, %v1465_v59 }
  0xfb   :  { %1147 = vmatmul.mubr.msk.f32.gmra.mrb[12].mxu1 %vm145_vm0, %v1472_v61 }
  0xfc   :  { %1149 = vmatprep.mubr.msk.f32.mxu1 %vm145_vm0, %v1479_v63 }
  0xff   :  { %1150 = vmatmul.mubr.msk.f32.gmra.mrb[14].mxu1 %vm145_vm0, %v1486_v1 }
 0x100   :  { %1152 = vmatprep.mubr.msk.f32.mxu1 %vm145_vm0, %v1493_v3 }
 0x103   :  { %1153 = vmatmul.mubr.msk.f32.gmra.mrb[16].mxu1 %vm145_vm0, %v1500_v6  ;;  %v897_v6 = vld [vmem:[%s1839_s4] sm:$0x3] }
 0x104   :  { %1155 = vmatprep.mubr.msk.f32.mxu1 %vm145_vm0, %v1507_v8  ;;  %1168 = vmatpush3.xpose.msk.msra.mxu1 %vm371_vm2, %v897_v6  ;;  %v1688_v8 = vld [vmem:[%s1838_s3] ss:$0 sm:$0xff]  ;;  %s1287_s3 = smov [#allocation2]  }
 0x105   :  { %s1011_s4 = sshll.u32 %s1287_s3, 4  ;;  %s1012_s4 = int_to_ptr.vmem [resolvable:$true] %s1011_s4 }
 0x106   :  { %p1265_p1 = scmp.lt.s32.totalorder %s1012_s4, %s1012_s4 }
 0x107   :  { %1156 = vmatmul.mubr.msk.f32.gmra.mrb[18].mxu1 %vm145_vm0, %v1514_v10 }
 0x108   :  { %1158 = vmatprep.mubr.msk.f32.mxu1 %vm145_vm0, %v119_v12 }
 0x10b   :  { %1159 = vmatmul.mubr.msk.f32.gmra.mrb[20].mxu1 %vm145_vm0, %v120_v14 }
 0x10c   :  { %1161 = vmatprep.mubr.msk.f32.mxu1 %vm145_vm0, %v121_v16 }
 0x10f   :  { %1162 = vmatmul.mubr.msk.f32.gmra.mrb[22].mxu1 %vm145_vm0, %v122_v18 }
 0x110   :  { %1164 = vmatprep.mubr.msk.f32.mxu1 %vm145_vm0, %v123_v20 }
 0x113   :  { %1165 = vmatmul.mubr.msk.f32.gmra.mrb[24].mxu1 %vm145_vm0, %v124_v21  ;;  %vm1286_vm0 = vmmov 0  }
 0x114   :  { %1169 = vmatprep.mubr.msk.f32.mxu1 %vm1286_vm0, %v1285_v5 }
 0x159   :  { %v260_v37 = vpop.f32.mrb[0].mxu0 }
 0x15a   :  { %355 = vst [vmem:[#allocation2] sm:$0xff] %v260_v37  ;;  %v1568_v38 = vpop.f32.mrb[1].mxu0 }
 0x15b   :  { %372 = vst.msk [vmem:[%s1843_s8] sm:$0xff] %vm371_vm2, %v1568_v38 }
 0x15d   :  { %v266_v39 = vpop.f32.mrb[2].mxu0 }
 0x15e   :  { %356 = vst [vmem:[#allocation2 + $0x8] sm:$0xff] %v266_v39  ;;  %v1575_v40 = vpop.f32.mrb[3].mxu0 }
 0x15f   :  { %373 = vst.msk [vmem:[%s1843_s8 + $0x8] sm:$0xff] %vm371_vm2, %v1575_v40 }
 0x161   :  { %v272_v41 = vpop.f32.mrb[4].mxu0 }
 0x162   :  { %357 = vst [vmem:[#allocation2 + $0x10] sm:$0xff] %v272_v41  ;;  %v1582_v42 = vpop.f32.mrb[5].mxu0 }
 0x163   :  { %374 = vst.msk [vmem:[%s1843_s8 + $0x10] sm:$0xff] %vm371_vm2, %v1582_v42 }
 0x165   :  { %v278_v43 = vpop.f32.mrb[6].mxu0 }
 0x166   :  { %358 = vst [vmem:[#allocation2 + $0x18] sm:$0xff] %v278_v43  ;;  %v1589_v44 = vpop.f32.mrb[7].mxu0 }
 0x167   :  { %375 = vst.msk [vmem:[%s1843_s8 + $0x18] sm:$0xff] %vm371_vm2, %v1589_v44 }
 0x169   :  { %v284_v45 = vpop.f32.mrb[8].mxu0 }
 0x16a   :  { %359 = vst [vmem:[#allocation2 + $0x20] sm:$0xff] %v284_v45  ;;  %v1596_v46 = vpop.f32.mrb[9].mxu0 }
 0x16b   :  { %376 = vst.msk [vmem:[%s1843_s8 + $0x20] sm:$0xff] %vm371_vm2, %v1596_v46 }
 0x16d   :  { %v290_v47 = vpop.f32.mrb[10].mxu0 }
 0x16e   :  { %360 = vst [vmem:[#allocation2 + $0x28] sm:$0xff] %v290_v47  ;;  %v1603_v48 = vpop.f32.mrb[11].mxu0 }
 0x16f   :  { %377 = vst.msk [vmem:[%s1843_s8 + $0x28] sm:$0xff] %vm371_vm2, %v1603_v48 }
 0x171   :  { %v296_v49 = vpop.f32.mrb[12].mxu0 }
 0x172   :  { %361 = vst [vmem:[#allocation2 + $0x30] sm:$0xff] %v296_v49  ;;  %v1610_v50 = vpop.f32.mrb[13].mxu0 }
 0x173   :  { %378 = vst.msk [vmem:[%s1843_s8 + $0x30] sm:$0xff] %vm371_vm2, %v1610_v50 }
 0x175   :  { %v302_v51 = vpop.f32.mrb[14].mxu0 }
 0x176   :  { %362 = vst [vmem:[#allocation2 + $0x38] sm:$0xff] %v302_v51  ;;  %v1617_v52 = vpop.f32.mrb[15].mxu0 }
 0x177   :  { %379 = vst.msk [vmem:[%s1843_s8 + $0x38] sm:$0xff] %vm371_vm2, %v1617_v52 }
 0x179   :  { %v308_v53 = vpop.f32.mrb[16].mxu0 }
 0x17a   :  { %363 = vst [vmem:[#allocation2 + $0x40] sm:$0xff] %v308_v53  ;;  %v1624_v54 = vpop.f32.mrb[17].mxu0 }
 0x17b   :  { %380 = vst.msk [vmem:[%s1843_s8 + $0x40] sm:$0xff] %vm371_vm2, %v1624_v54 }
 0x17d   :  { %v314_v55 = vpop.f32.mrb[18].mxu0 }
 0x17e   :  { %364 = vst [vmem:[#allocation2 + $0x48] sm:$0xff] %v314_v55  ;;  %v1631_v56 = vpop.f32.mrb[19].mxu0 }
 0x17f   :  { %381 = vst.msk [vmem:[%s1843_s8 + $0x48] sm:$0xff] %vm371_vm2, %v1631_v56 }
 0x181   :  { %v320_v57 = vpop.f32.mrb[20].mxu0 }
 0x182   :  { %365 = vst [vmem:[#allocation2 + $0x50] sm:$0xff] %v320_v57  ;;  %v1638_v58 = vpop.f32.mrb[21].mxu0 }
 0x183   :  { %382 = vst.msk [vmem:[%s1843_s8 + $0x50] sm:$0xff] %vm371_vm2, %v1638_v58 }
 0x185   :  { %v326_v59 = vpop.f32.mrb[22].mxu0 }
 0x186   :  { %366 = vst [vmem:[#allocation2 + $0x58] sm:$0xff] %v326_v59  ;;  %v1645_v60 = vpop.f32.mrb[23].mxu0 }
 0x187   :  { %383 = vst.msk [vmem:[%s1843_s8 + $0x58] sm:$0xff] %vm371_vm2, %v1645_v60 }
 0x189   :  { %v332_v61 = vpop.f32.mrb[24].mxu0 }
 0x18a   :  { %367 = vst [vmem:[#allocation2 + $0x60] sm:$0xff] %v332_v61  ;;  %v1652_v62 = vpop.f32.mrb[25].mxu0 }
 0x18b   :  { %384 = vst.msk [vmem:[%s1843_s8 + $0x60] sm:$0xff] %vm371_vm2, %v1652_v62 }
 0x18d   :  { %v338_v63 = vpop.f32.mrb[26].mxu0 }
 0x18e   :  { %368 = vst [vmem:[#allocation2 + $0x68] sm:$0xff] %v338_v63  ;;  %v1659_v0 = vpop.f32.mrb[27].mxu0 }
 0x18f   :  { %385 = vst.msk [vmem:[%s1843_s8 + $0x68] sm:$0xff] %vm371_vm2, %v1659_v0 }
 0x191   :  { %v344_v1 = vpop.f32.mrb[28].mxu0 }
 0x192   :  { %369 = vst [vmem:[#allocation2 + $0x70] sm:$0xff] %v344_v1  ;;  %v1666_v2 = vpop.f32.mrb[29].mxu0 }
 0x193   :  { %386 = vst.msk [vmem:[%s1843_s8 + $0x70] sm:$0xff] %vm371_vm2, %v1666_v2 }
 0x195   :  { %v350_v3 = vpop.f32.mrb[30].mxu0 }
 0x196   :  { %370 = vst [vmem:[#allocation2 + $0x78] sm:$0xff] %v350_v3  ;;  %v1673_v4 = vpop.f32.mrb[31].mxu0 }
 0x197   :  { %387 = vst.msk [vmem:[%s1843_s8 + $0x78] sm:$0xff] %vm371_vm2, %v1673_v4  ;;  %s1260_s8 = scalar_lea.vmem %s1012_s4, 2048 }
 0x198   :  { %p1261_p0 = scmp.ne.s32.totalorder %s1012_s4, %s1260_s8  ;;  %p1266_p2 = scmp.lt.s32.totalorder %s1260_s8, %s1260_s8 }
 0x19a   :  { %p1267_p3 = por %p1266_p2, %p1265_p1 }
 0x19c   :  { %p1268_p4 = pnand %p1267_p3, %p1261_p0 }
 0x1ca   :  { %v1145_v7 = vpop.f32.mrb[10].mxu1 }
 0x1cb   :  { %v588_v9 = vpop.f32.mrb[11].mxu1  ;;  %v594_v10 = vadd.f32 %v1145_v7, %v1688_v8 }
 0x1cc   :  { %v589_v12 = vadd.f32 %v1688_v8, %v588_v9 }
 0x1cd   :  { %v1692_v14 = vmul.f32 0.088388346, %v594_v10 }
 0x1ce   :  { %v1148_v11 = vpop.f32.mrb[12].mxu1  ;;  %v1694_v16 = vmul.f32 0.088388346, %v589_v12 }
 0x1cf   :  { %v598_v13 = vpop.f32.mrb[13].mxu1  ;;  %v604_v5 = vadd.f32 %v1148_v11, %v1688_v8  ;;  %v698_v22 = vsel %vm371_vm2, %v1692_v14, -inf }
 0x1d0   :  { %v599_v19 = vadd.f32 %v1688_v8, %v598_v13  ;;  %v683_v25 = vsel %vm371_vm2, %v1694_v16, -inf }
 0x1d1   :  { %v1708_v26 = vmul.f32 0.088388346, %v604_v5 }
 0x1d2   :  { %v1151_v15 = vpop.f32.mrb[14].mxu1  ;;  %v1713_v30 = vmul.f32 0.088388346, %v599_v19 }
 0x1d3   :  { %v614_v17 = vadd.f32 %v1151_v15, %v1688_v8  ;;  %v608_v18 = vpop.f32.mrb[15].mxu1  ;;  %v699_v39 = vsel %vm371_vm2, %v1708_v26, -inf }
 0x1d4   :  { %v609_v20 = vadd.f32 %v1688_v8, %v608_v18  ;;  %v684_v47 = vsel %vm371_vm2, %v1713_v30, -inf }
 0x1d5   :  { %v1700_v21 = vmul.f32 0.088388346, %v614_v17 }
 0x1d6   :  { %v1704_v23 = vmul.f32 0.088388346, %v609_v20  ;;  %v1154_v24 = vpop.f32.mrb[16].mxu1 }
 0x1d7   :  { %v700_v27 = vsel %vm371_vm2, %v1700_v21, -inf  ;;  %v624_v28 = vadd.f32 %v1154_v24, %v1688_v8  ;;  %v618_v29 = vpop.f32.mrb[17].mxu1 }
 0x1d8   :  { %v701_v31 = vmax.f32 %v698_v22, %v700_v27  ;;  %v685_v32 = vsel %vm371_vm2, %v1704_v23, -inf  ;;  %v619_v33 = vadd.f32 %v1688_v8, %v618_v29 }
 0x1d9   :  { %v686_v34 = vmax.f32 %v683_v25, %v685_v32  ;;  %v674_v35 = vmul.f32 0.088388346, %v624_v28 }
 0x1da   :  { %v1718_v36 = vmul.f32 0.088388346, %v619_v33  ;;  %v1157_v37 = vpop.f32.mrb[18].mxu1 }
 0x1db   :  { %v702_v41 = vsel %vm371_vm2, %v674_v35, -inf  ;;  %v634_v43 = vadd.f32 %v1157_v37, %v1688_v8  ;;  %v628_v45 = vpop.f32.mrb[19].mxu1 }
 0x1dc   :  { %v703_v49 = vmax.f32 %v699_v39, %v702_v41  ;;  %v687_v51 = vsel %vm371_vm2, %v1718_v36, -inf  ;;  %v629_v53 = vadd.f32 %v1688_v8, %v628_v45 }
 0x1dd   :  { %v688_v55 = vmax.f32 %v684_v47, %v687_v51  ;;  %v676_v57 = vmul.f32 0.088388346, %v634_v43 }
 0x1de   :  { %v1729_v59 = vmul.f32 0.088388346, %v629_v53  ;;  %v1160_v61 = vpop.f32.mrb[20].mxu1 }
 0x1df   :  { %v704_v63 = vsel %vm371_vm2, %v676_v57, -inf  ;;  %v644_v1 = vadd.f32 %v1160_v61, %v1688_v8  ;;  %v638_v3 = vpop.f32.mrb[21].mxu1 }
 0x1e0   :  { %v705_v6 = vmax.f32 %v701_v31, %v704_v63  ;;  %v689_v7 = vsel %vm371_vm2, %v1729_v59, -inf  ;;  %v639_v9 = vadd.f32 %v1688_v8, %v638_v3 }
 0x1e1   :  { %v690_v10 = vmax.f32 %v686_v34, %v689_v7  ;;  %v678_v11 = vmul.f32 0.088388346, %v644_v1 }
 0x1e2   :  { %v1736_v12 = vmul.f32 0.088388346, %v639_v9  ;;  %v1163_v13 = vpop.f32.mrb[22].mxu1 }
 0x1e3   :  { %v706_v15 = vsel %vm371_vm2, %v678_v11, -inf  ;;  %v654_v5 = vadd.f32 %v1163_v13, %v1688_v8  ;;  %v648_v17 = vpop.f32.mrb[23].mxu1 }
 0x1e4   :  { %v707_v18 = vmax.f32 %v703_v49, %v706_v15  ;;  %v691_v19 = vsel %vm371_vm2, %v1736_v12, -inf  ;;  %v649_v20 = vadd.f32 %v1688_v8, %v648_v17 }
 0x1e5   :  { %v692_v22 = vmax.f32 %v688_v55, %v691_v19  ;;  %v680_v24 = vmul.f32 0.088388346, %v654_v5 }
 0x1e6   :  { %v1743_v25 = vmul.f32 0.088388346, %v649_v20  ;;  %v1166_v27 = vpop.f32.mrb[24].mxu1 }
 0x1e7   :  { %v708_v28 = vsel %vm371_vm2, %v680_v24, -inf  ;;  %v664_v29 = vadd.f32 %v1166_v27, %v1688_v8  ;;  %v658_v31 = vpop.f32.mrb[25].mxu1 }
 0x1e8   :  { %v709_v32 = vmax.f32 %v705_v6, %v708_v28  ;;  %v693_v33 = vsel %vm371_vm2, %v1743_v25, -inf  ;;  %v659_v34 = vadd.f32 %v1688_v8, %v658_v31 }
 0x1e9   :  { %v694_v37 = vmax.f32 %v690_v10, %v693_v33  ;;  %v682_v39 = vmul.f32 0.088388346, %v664_v29 }
 0x1ea   :  { %v1750_v41 = vmul.f32 0.088388346, %v659_v34 }
 0x1eb   :  { %v710_v43 = vsel %vm371_vm2, %v682_v39, -inf }
 0x1ec   :  { %v711_v45 = vmax.f32 %v707_v18, %v710_v43  ;;  %v695_v47 = vsel %vm371_vm2, %v1750_v41, -inf }
 0x1ed   :  { %v696_v49 = vmax.f32 %v692_v22, %v695_v47 }
 0x1ee   :  { %v712_v51 = vmax.f32 %v709_v32, %v711_v45 }
 0x1ef   :  { %v697_v53 = vmax.f32 %v694_v37, %v696_v49 }
 0x1f0   :  { %v714_v55 = vsub.f32 %v1692_v14, %v712_v51  ;;  %v716_v61 = vsub.f32 %v1708_v26, %v712_v51  ;;  %v718_v63 = vsub.f32 %v1700_v21, %v712_v51  ;;  %v720_v8 = vsub.f32 %v674_v35, %v712_v51 }
 0x1f1   :  { %v722_v1 = vsub.f32 %v676_v57, %v712_v51  ;;  %v724_v3 = vsub.f32 %v678_v11, %v712_v51  ;;  %v726_v6 = vsub.f32 %v680_v24, %v712_v51  ;;  %v728_v7 = vsub.f32 %v682_v39, %v712_v51 }
 0x1f2   :  { %v731_v9 = vmul.f32 1.442695, %v714_v55  ;;  %v735_v10 = vmul.f32 1.442695, %v716_v61  ;;  %v739_v13 = vmul.f32 1.442695, %v718_v63  ;;  %v713_v15 = vsub.f32 %v1694_v16, %v697_v53 }
 0x1f3   :  { %v743_v5 = vmul.f32 1.442695, %v720_v8  ;;  %v715_v17 = vsub.f32 %v1713_v30, %v697_v53  ;;  %v747_v18 = vmul.f32 1.442695, %v722_v1  ;;  %v751_v14 = vmul.f32 1.442695, %v724_v3 }
 0x1f4   :  { %1224 = vpow2.f32 %v731_v9  ;;  %v717_v26 = vsub.f32 %v1704_v23, %v697_v53  ;;  %v719_v21 = vsub.f32 %v1718_v36, %v697_v53  ;;  %v721_v35 = vsub.f32 %v1729_v59, %v697_v53 }
 0x1f5   :  { %1226 = vpow2.f32 %v735_v10  ;;  %v723_v57 = vsub.f32 %v1736_v12, %v697_v53  ;;  %v755_v11 = vmul.f32 1.442695, %v726_v6  ;;  %v725_v19 = vsub.f32 %v1743_v25, %v697_v53 }
 0x1f6   :  { %1228 = vpow2.f32 %v739_v13  ;;  %v727_v16 = vsub.f32 %v1750_v41, %v697_v53  ;;  %v759_v30 = vmul.f32 1.442695, %v728_v7  ;;  %v729_v20 = vmul.f32 1.442695, %v713_v15 }
 0x1f7   :  { %1230 = vpow2.f32 %v743_v5  ;;  %v733_v22 = vmul.f32 1.442695, %v715_v17  ;;  %v737_v23 = vmul.f32 1.442695, %v717_v26  ;;  %v741_v36 = vmul.f32 1.442695, %v719_v21 }
 0x1f8   :  { %1232 = vpow2.f32 %v747_v18  ;;  %v745_v59 = vmul.f32 1.442695, %v721_v35  ;;  %v749_v27 = vmul.f32 1.442695, %v723_v57  ;;  %v753_v33 = vmul.f32 1.442695, %v725_v19 }
 0x1f9   :  { %1234 = vpow2.f32 %v751_v14  ;;  %v757_v43 = vmul.f32 1.442695, %v727_v16 }
 0x1fa   :  { %1236 = vpow2.f32 %v755_v11 }
 0x1fb   :  { %1238 = vpow2.f32 %v759_v30 }
 0x1fc   :  { %1240 = vpow2.f32 %v729_v20 }
 0x1fd   :  { %1242 = vpow2.f32 %v733_v22 }
 0x1fe   :  { %v1225_v12 = vpop.eup %1224  ;;  %1244 = vpow2.f32 %v737_v23 }
 0x1ff   :  { %v1227_v24 = vpop.eup %1226  ;;  %v776_v25 = vsel %vm371_vm2, %v1225_v12, 0.0  ;;  %1246 = vpow2.f32 %v741_v36 }
 0x200   :  { %v1229_v28 = vpop.eup %1228  ;;  %v777_v29 = vsel %vm371_vm2, %v1227_v24, 0.0  ;;  %1248 = vpow2.f32 %v745_v59 }
 0x201   :  { %v1231_v31 = vpop.eup %1230  ;;  %v778_v32 = vadd.f32 %v777_v29, %v776_v25  ;;  %v779_v37 = vsel %vm371_vm2, %v1229_v28, 0.0  ;;  %1250 = vpow2.f32 %v749_v27 }
 0x202   :  { %v1233_v34 = vpop.eup %1232  ;;  %v781_v47 = vsel %vm371_vm2, %v1231_v31, 0.0  ;;  %1252 = vpow2.f32 %v753_v33 }
 0x203   :  { %v1235_v39 = vpop.eup %1234  ;;  %v780_v41 = vadd.f32 %v779_v37, %v778_v32  ;;  %v783_v55 = vsel %vm371_vm2, %v1233_v34, 0.0  ;;  %1254 = vpow2.f32 %v757_v43 }
 0x204   :  { %v1237_v45 = vpop.eup %1236  ;;  %v785_v3 = vsel %vm371_vm2, %v1235_v39, 0.0 }
 0x205   :  { %v1239_v49 = vpop.eup %1238  ;;  %v782_v51 = vadd.f32 %v781_v47, %v780_v41  ;;  %v787_v13 = vsel %vm371_vm2, %v1237_v45, 0.0 }
 0x206   :  { %v1241_v53 = vpop.eup %1240  ;;  %v789_v14 = vsel %vm371_vm2, %v1239_v49, 0.0 }
 0x207   :  { %v1243_v61 = vpop.eup %1242  ;;  %v784_v63 = vadd.f32 %v783_v55, %v782_v51  ;;  %v761_v8 = vsel %vm371_vm2, %v1241_v53, 0.0 }
 0x208   :  { %v1245_v1 = vpop.eup %1244  ;;  %v762_v6 = vsel %vm371_vm2, %v1243_v61, 0.0 }
 0x209   :  { %v1247_v7 = vpop.eup %1246  ;;  %v786_v9 = vadd.f32 %v785_v3, %v784_v63  ;;  %v763_v10 = vadd.f32 %v762_v6, %v761_v8  ;;  %v764_v15 = vsel %vm371_vm2, %v1245_v1, 0.0 }
 0x20a   :  { %v1249_v5 = vpop.eup %1248  ;;  %v766_v26 = vsel %vm371_vm2, %v1247_v7, 0.0 }
 0x20b   :  { %v788_v17 = vadd.f32 %v787_v13, %v786_v9  ;;  %v765_v18 = vadd.f32 %v764_v15, %v763_v10  ;;  %v1251_v21 = vpop.eup %1250  ;;  %v768_v11 = vsel %vm371_vm2, %v1249_v5, 0.0 }
 0x20c   :  { %v1253_v19 = vpop.eup %1252  ;;  %v770_v30 = vsel %vm371_vm2, %v1251_v21, 0.0 }
 0x20d   :  { %v790_v35 = vadd.f32 %v789_v14, %v788_v17  ;;  %v767_v57 = vadd.f32 %v766_v26, %v765_v18  ;;  %v1255_v20 = vpop.eup %1254  ;;  %v772_v23 = vsel %vm371_vm2, %v1253_v19, 0.0 }
 0x20e   :  { %v774_v59 = vsel %vm371_vm2, %v1255_v20, 0.0 }
 0x20f   :  { %1256 = vrcp.f32 %v790_v35  ;;  %v769_v16 = vadd.f32 %v768_v11, %v767_v57 }
 0x211   :  { %v771_v22 = vadd.f32 %v770_v30, %v769_v16 }
 0x213   :  { %v773_v36 = vadd.f32 %v772_v23, %v771_v22 }
 0x215   :  { %v775_v25 = vadd.f32 %v774_v59, %v773_v36 }
 0x217   :  { %1258 = vrcp.f32 %v775_v25 }
 0x219   :  { %v1257_v27 = vpop.eup %1256 }
 0x21a   :  { %v808_v29 = vmul.f32 %v1257_v27, %v1239_v49  ;;  %v794_v32 = vmul.f32 %v1257_v27, %v1225_v12  ;;  %v796_v33 = vmul.f32 %v1257_v27, %v1227_v24  ;;  %v798_v37 = vmul.f32 %v1257_v27, %v1229_v28 }
 0x21b   :  { %v800_v41 = vmul.f32 %v1257_v27, %v1231_v31  ;;  %v802_v43 = vmul.f32 %v1257_v27, %v1233_v34  ;;  %v804_v47 = vmul.f32 %v1257_v27, %v1235_v39  ;;  %v806_v51 = vmul.f32 %v1257_v27, %v1237_v45 }
 0x21c   :  { %v824_v55 = vmul.f32 %v808_v29, %v1673_v4  ;;  %v810_v63 = vmul.f32 %v794_v32, %v1575_v40  ;;  %v812_v8 = vmul.f32 %v796_v33, %v1589_v44  ;;  %v814_v3 = vmul.f32 %v798_v37, %v1603_v48 }
 0x21d   :  { %v816_v6 = vmul.f32 %v800_v41, %v1617_v52  ;;  %v818_v9 = vmul.f32 %v802_v43, %v1631_v56  ;;  %v820_v12 = vmul.f32 %v804_v47, %v1645_v60  ;;  %v822_v24 = vmul.f32 %v806_v51, %v1659_v0 }
 0x21e   :  { %v889_v28 = vsel %vm371_vm2, %v824_v55, 0.0  ;;  %v826_v31 = vsel %vm371_vm2, %v810_v63, 0.0  ;;  %v835_v4 = vsel %vm371_vm2, %v812_v8, 0.0  ;;  %v844_v40 = vsel %vm371_vm2, %v814_v3, 0.0 }
 0x21f   :  { %v853_v44 = vsel %vm371_vm2, %v816_v6, 0.0  ;;  %v862_v48 = vsel %vm371_vm2, %v818_v9, 0.0  ;;  %v871_v52 = vsel %vm371_vm2, %v820_v12, 0.0  ;;  %v880_v56 = vsel %vm371_vm2, %v822_v24, 0.0 }
 0x221   :  { %v1259_v34 = vpop.eup %1258 }
 0x222   :  { %v807_v60 = vmul.f32 %v1259_v34, %v1255_v20  ;;  %v793_v39 = vmul.f32 %v1259_v34, %v1241_v53  ;;  %v795_v0 = vmul.f32 %v1259_v34, %v1243_v61  ;;  %v797_v45 = vmul.f32 %v1259_v34, %v1245_v1 }
 0x223   :  { %v799_v49 = vmul.f32 %v1259_v34, %v1247_v7  ;;  %v801_v10 = vmul.f32 %v1259_v34, %v1249_v5  ;;  %v803_v13 = vmul.f32 %v1259_v34, %v1251_v21  ;;  %v805_v15 = vmul.f32 %v1259_v34, %v1253_v19 }
 0x224   :  { %v823_v17 = vmul.f32 %v807_v60, %v1666_v2  ;;  %v809_v18 = vmul.f32 %v793_v39, %v1568_v38  ;;  %v811_v14 = vmul.f32 %v795_v0, %v1582_v42  ;;  %v813_v26 = vmul.f32 %v797_v45, %v1596_v46 }
 0x225   :  { %v815_v35 = vmul.f32 %v799_v49, %v1610_v50  ;;  %v817_v57 = vmul.f32 %v801_v10, %v1624_v54  ;;  %v819_v53 = vmul.f32 %v803_v13, %v1638_v58  ;;  %v821_v61 = vmul.f32 %v805_v15, %v1652_v62 }
 0x226   :  { %v888_v1 = vsel %vm371_vm2, %v823_v17, 0.0  ;;  %v825_v7 = vsel %vm371_vm2, %v809_v18, 0.0  ;;  %v834_v2 = vsel %vm371_vm2, %v811_v14, 0.0  ;;  %v843_v38 = vsel %vm371_vm2, %v813_v26, 0.0 }
 0x227   :  { %v827_v5 = vadd.f32 %v826_v31, %v825_v7  ;;  %v836_v42 = vadd.f32 %v835_v4, %v834_v2  ;;  %v845_v21 = vadd.f32 %v844_v40, %v843_v38  ;;  %v852_v46 = vsel %vm371_vm2, %v815_v35, 0.0 }
 0x228   :  { %v854_v50 = vadd.f32 %v853_v44, %v852_v46  ;;  %v861_v54 = vsel %vm371_vm2, %v817_v57, 0.0  ;;  %v870_v58 = vsel %vm371_vm2, %v819_v53, 0.0  ;;  %v879_v62 = vsel %vm371_vm2, %v821_v61, 0.0 }
 0x229   :  { %v828_v11 = vrot.slane %v827_v5, 4  ;;  %v837_v19 = vrot.slane %v836_v42, 4  ;;  %v846_v16 = vrot.slane %v845_v21, 4  ;;  %v863_v30 = vadd.f32 %v862_v48, %v861_v54 }
 0x22a   :  { %v855_v20 = vrot.slane %v854_v50, 4  ;;  %v872_v22 = vadd.f32 %v871_v52, %v870_v58  ;;  %v881_v23 = vadd.f32 %v880_v56, %v879_v62  ;;  %v890_v36 = vadd.f32 %v889_v28, %v888_v1 }
 0x22b   :  { %v829_v59 = vadd.f32 %v828_v11, %v827_v5  ;;  %v838_v25 = vadd.f32 %v837_v19, %v836_v42  ;;  %v847_v27 = vadd.f32 %v846_v16, %v845_v21  ;;  %v864_v29 = vrot.slane %v863_v30, 4 }
 0x22c   :  { %v856_v32 = vadd.f32 %v855_v20, %v854_v50  ;;  %v873_v33 = vrot.slane %v872_v22, 4  ;;  %v882_v37 = vrot.slane %v881_v23, 4  ;;  %v891_v41 = vrot.slane %v890_v36, 4 }
 0x22d   :  { %v830_v43 = vrot.slane %v829_v59, 2  ;;  %v839_v47 = vrot.slane %v838_v25, 2  ;;  %v848_v51 = vrot.slane %v847_v27, 2  ;;  %v865_v55 = vadd.f32 %v864_v29, %v863_v30 }
 0x22e   :  { %v857_v63 = vrot.slane %v856_v32, 2  ;;  %v874_v8 = vadd.f32 %v873_v33, %v872_v22  ;;  %v883_v3 = vadd.f32 %v882_v37, %v881_v23  ;;  %v892_v6 = vadd.f32 %v891_v41, %v890_v36 }
 0x22f   :  { %v831_v9 = vadd.f32 %v830_v43, %v829_v59  ;;  %v840_v12 = vadd.f32 %v839_v47, %v838_v25  ;;  %v849_v24 = vadd.f32 %v848_v51, %v847_v27  ;;  %v866_v28 = vrot.slane %v865_v55, 2 }
 0x230   :  { %v858_v31 = vadd.f32 %v857_v63, %v856_v32  ;;  %v875_v4 = vrot.slane %v874_v8, 2  ;;  %v884_v40 = vrot.slane %v883_v3, 2  ;;  %v893_v34 = vrot.slane %v892_v6, 2 }
 0x231   :  { %v832_v44 = vrot.slane %v831_v9, 1  ;;  %v841_v48 = vrot.slane %v840_v12, 1  ;;  %v850_v52 = vrot.slane %v849_v24, 1  ;;  %v867_v56 = vadd.f32 %v866_v28, %v865_v55 }
 0x232   :  { %v859_v60 = vrot.slane %v858_v31, 1  ;;  %v876_v39 = vadd.f32 %v875_v4, %v874_v8  ;;  %v885_v0 = vadd.f32 %v884_v40, %v883_v3  ;;  %v894_v45 = vadd.f32 %v893_v34, %v892_v6 }
 0x233   :  { %v833_v49 = vadd.f32 %v832_v44, %v831_v9  ;;  %v842_v10 = vadd.f32 %v841_v48, %v840_v12  ;;  %v851_v13 = vadd.f32 %v850_v52, %v849_v24  ;;  %v868_v15 = vrot.slane %v867_v56, 1 }
 0x234   :  { %v877_v17 = vrot.slane %v876_v39, 1  ;;  %v886_v18 = vrot.slane %v885_v0, 1  ;;  %v860_v14 = vadd.f32 %v859_v60, %v858_v31  ;;  %v895_v26 = vrot.slane %v894_v45, 1 }
 0x235   :  { %v914_v35 = vsel %vm913_vm3, %v842_v10, %v833_v49  ;;  %v869_v57 = vadd.f32 %v868_v15, %v867_v56 }
 0x236   :  { %v916_v53 = vsel %vm915_vm4, %v851_v13, %v914_v35  ;;  %v878_v61 = vadd.f32 %v877_v17, %v876_v39  ;;  %v887_v7 = vadd.f32 %v886_v18, %v885_v0  ;;  %v896_v38 = vadd.f32 %v895_v26, %v894_v45 }
 0x237   :  { %v918_v1 = vsel %vm917_vm5, %v860_v14, %v916_v53 }
 0x238   :  { %v920_v2 = vsel %vm919_vm6, %v869_v57, %v918_v1 }
 0x239   :  { %v922_v5 = vsel %vm921_vm7, %v878_v61, %v920_v2 }
 0x23a   :  { %v924_v42 = vsel %vm923_vm8, %v887_v7, %v922_v5 }
 0x23b   :  { %v926_v21 = vsel %vm925_vm9, %v896_v38, %v924_v42 }
 0x23c   :  { %1170 = vmatmul.mubr.msk.f32.vlgmr.msra.gmra.mrb[26].mxu1 %vm371_vm2, %v926_v21 }
 0x23d   :  { %1271 = shalt.err (!%p1268_p4)
}
 0x23e   :  { %s1272_s22 = scalar_lea.hbm %s1842_s7, 2048 }
 0x23f   :  { %p1273_p5 = scmp.ne.s32.totalorder %s1842_s7, %s1272_s22  ;;  %p1276_p6 = scmp.lt.u32.totalorder %s1272_s22, %s1842_s7 }
 0x241   :  { %p1278_p7 = pnand %p1276_p6, %p1273_p5 }
 0x243   :  { %1281 = shalt.err (!%p1278_p7)
}
 0x244   :  { %s1288_s27 = smov 128   ;;  %s1289_s28 = smov 8   ;;  %v1061_v46 = vld [vmem:[%s1840_s5] ss:$0 sm:$0xff]  ;;  %vm1002_vm10 = vcmask 15360  }
 0x245   :  { %1017 = dma.vmem_to_hbm [thread:$0]  %s1012_s4, 2048, %s1842_s7, [#allocation3], %s1288_s27, %s1288_s27, %s1289_s28  }
 0x30f   :  { %v998_v50 = vpop.f32.mrb[26].mxu1 }
 0x310   :  { %v999_v54 = vadd.f32 %v1061_v46, %v998_v50  ;;  %v1171_v58 = vpop.f32.mrb[27].mxu1 }
 0x312   :  { %1003 = vst.msk [vmem:[%s1841_s6] sm:$0xff] %vm1002_vm10, %v999_v54 }
 0x313   :  { %1282 = dma.done.wait [#allocation3], 2048  }
 0x314   :  { %1283 = vsyncadd [#allocation3], 4294965248 }
 0x315   :  { %1027 = vsyncpa [#allocation3], 1 }

</bundles_post_ra>
